<compile_context>
chip_gen: v6e
topology: v6e:2x2x1
jax: 0.10.0
libtpu: 0.0.40
codegen_flags: <defaults>
</compile_context>

<pallas_src>
import jax
import jax.numpy as jnp
from jax.experimental import pallas as pl
from jax.experimental.pallas import tpu as pltpu


def _round_up(x, m):
    return ((x + m - 1) // m) * m


def classifier_kernel(x_ref, w1_ref, b1_ref, w2_ref, b2_ref,
                      w3_ref, b3_ref, w4_ref, b4_ref, out_ref):
    # x_ref: (TB, K_pad) bf16 tile. Weights bf16, biases f32 rows (1, H).
    # fc1 + relu (f32 accumulation on MXU)
    h = jnp.dot(x_ref[...], w1_ref[...],
                preferred_element_type=jnp.float32) + b1_ref[...]
    h = jnp.maximum(h, 0.0).astype(w2_ref.dtype)
    # fc2 + relu
    h = jnp.dot(h, w2_ref[...],
                preferred_element_type=jnp.float32) + b2_ref[...]
    h = jnp.maximum(h, 0.0).astype(w3_ref.dtype)
    # fc3 + relu
    h = jnp.dot(h, w3_ref[...],
                preferred_element_type=jnp.float32) + b3_ref[...]
    h = jnp.maximum(h, 0.0).astype(w4_ref.dtype)
    # fc4 (logits; padded classes carry a -1e30 bias -> exp underflows to 0)
    logits = jnp.dot(h, w4_ref[...],
                     preferred_element_type=jnp.float32) + b4_ref[...]
    # numerically-stable log_softmax in f32 (reductions -> XLU, exp/log -> EUP)
    m = jnp.max(logits, axis=-1, keepdims=True)
    shifted = logits - m
    lse = jnp.log(jnp.sum(jnp.exp(shifted), axis=-1, keepdims=True))
    out_ref[...] = shifted - lse


def classifier_forward(image, params, *, block_b=256, compute_dtype=jnp.bfloat16):
    """image: (B, 1, slen, slen) float32 NCHW. Returns (B, n_classes) log-probs."""
    w1, b1, w2, b2, w3, b3, w4, b4 = params
    n_pixels = w1.shape[0]
    hidden = w1.shape[1]
    n_classes = w4.shape[1]

    # Glue: flatten exactly like torch's .view(-1, n_pixels)
    x = image.reshape(-1, n_pixels).astype(jnp.float32)
    B = x.shape[0]

    # Lane-aligned padded dims (zero padding is numerically exact).
    K_pad = _round_up(n_pixels, 128)          # 784 -> 896
    C_pad = _round_up(n_classes, 128)         # 10  -> 128

    # Batch tile: sublane-aligned (16 for bf16 packing when possible),
    # capped at block_b (MXU-sized).
    sub = 16 if B >= 16 else 8
    TB = min(block_b, _round_up(max(B, 1), sub))
    B_pad = _round_up(B, TB)

    x_p = jnp.zeros((B_pad, K_pad), jnp.float32).at[:B, :n_pixels].set(x)
    w1_p = jnp.zeros((K_pad, hidden), jnp.float32).at[:n_pixels, :].set(w1)
    w4_p = jnp.zeros((hidden, C_pad), jnp.float32).at[:, :n_classes].set(w4)
    # Padded class columns get a huge negative bias -> exp underflows to 0,
    # so log_softmax over C_pad equals log_softmax over the real classes.
    b4_p = jnp.full((C_pad,), -1e30, jnp.float32).at[:n_classes].set(b4)

    # bf16 matmul operands; biases stay f32.
    x_p = x_p.astype(compute_dtype)
    w1_c = w1_p.astype(compute_dtype)
    w2_c = w2.astype(compute_dtype)
    w3_c = w3.astype(compute_dtype)
    w4_c = w4_p.astype(compute_dtype)

    b1r = b1.reshape(1, -1).astype(jnp.float32)
    b2r = b2.reshape(1, -1).astype(jnp.float32)
    b3r = b3.reshape(1, -1).astype(jnp.float32)
    b4r = b4_p.reshape(1, -1)

    const = lambda i: (0, 0)
    grid = (B_pad // TB,)

    out = pl.pallas_call(
        classifier_kernel,
        out_shape=jax.ShapeDtypeStruct((B_pad, C_pad), jnp.float32),
        grid=grid,
        in_specs=[
            pl.BlockSpec((TB, K_pad), lambda i: (i, 0)),   # x: batch-tiled
            pl.BlockSpec((K_pad, hidden), const),          # w1 (resident)
            pl.BlockSpec((1, hidden), const),              # b1
            pl.BlockSpec((hidden, hidden), const),         # w2
            pl.BlockSpec((1, hidden), const),               # b2
            pl.BlockSpec((hidden, hidden), const),          # w3
            pl.BlockSpec((1, hidden), const),               # b3
            pl.BlockSpec((hidden, C_pad), const),           # w4 (lane-padded)
            pl.BlockSpec((1, C_pad), const),                # b4 (-1e30 padded)
        ],
        out_specs=pl.BlockSpec((TB, C_pad), lambda i: (i, 0)),
        compiler_params=pltpu.CompilerParams(
            dimension_semantics=("parallel",),
            vmem_limit_bytes=64 << 20),
    )(x_p, w1_c, b1r, w2_c, b2r, w3_c, b3r, w4_c, b4r)

    return out[:B, :n_classes]


def init_params(key, slen=28, n_classes=10):
    """Deterministic init matching nn.Linear's U(-1/sqrt(fan_in), 1/sqrt(fan_in))."""
    n_pixels = slen * slen
    dims = [(n_pixels, 256), (256, 256), (256, 256), (256, n_classes)]
    params = []
    for (fan_in, fan_out) in dims:
        key, kw, kb = jax.random.split(key, 3)
        bound = 1.0 / jnp.sqrt(fan_in)
        w = jax.random.uniform(kw, (fan_in, fan_out), jnp.float32, -bound, bound)
        b = jax.random.uniform(kb, (fan_out,), jnp.float32, -bound, bound)
        params += [w, b]
    return tuple(params)


def reference_forward_f32(image, params):
    """Pure-JAX f32 reference (PyTorch semantics)."""
    w1, b1, w2, b2, w3, b3, w4, b4 = params
    h = image.reshape(-1, w1.shape[0]).astype(jnp.float32)
    h = jnp.maximum(h @ w1 + b1, 0.0)
    h = jnp.maximum(h @ w2 + b2, 0.0)
    h = jnp.maximum(h @ w3 + b3, 0.0)
    logits = h @ w4 + b4
    return jax.nn.log_softmax(logits, axis=1)


def reference_forward_mixed(image, params, compute_dtype=jnp.bfloat16):
    """Pure-JAX reference mirroring the kernel's bf16-operand / f32-accum math."""
    w1, b1, w2, b2, w3, b3, w4, b4 = params
    h = image.reshape(-1, w1.shape[0]).astype(compute_dtype)
    h = jnp.dot(h, w1.astype(compute_dtype),
                preferred_element_type=jnp.float32) + b1
    h = jnp.maximum(h, 0.0).astype(compute_dtype)
    h = jnp.dot(h, w2.astype(compute_dtype),
                preferred_element_type=jnp.float32) + b2
    h = jnp.maximum(h, 0.0).astype(compute_dtype)
    h = jnp.dot(h, w3.astype(compute_dtype),
                preferred_element_type=jnp.float32) + b3
    h = jnp.maximum(h, 0.0).astype(compute_dtype)
    logits = jnp.dot(h, w4.astype(compute_dtype),
                     preferred_element_type=jnp.float32) + b4
    return jax.nn.log_softmax(logits, axis=1)


if __name__ == "__main__":
    slen = 28
    n_classes = 10
    batch = 8

    key = jax.random.PRNGKey(0)
    key, k_img = jax.random.split(key)
    image = jax.random.uniform(k_img, (batch, 1, slen, slen), jnp.float32)

    params = init_params(jax.random.PRNGKey(0), slen=slen, n_classes=n_classes)

    out = classifier_forward(image, params)
    out = jax.block_until_ready(out)
    assert out.shape == (batch, n_classes)

    # Strict check vs a reference that mirrors the kernel's bf16/f32 arithmetic.
    ref_mixed = reference_forward_mixed(image, params)
    assert jnp.allclose(out, ref_mixed, atol=2e-3, rtol=2e-3), \
        "mismatch vs mixed-precision JAX reference"

    # Loose check vs the full-f32 (PyTorch-semantics) reference.
    ref_f32 = reference_forward_f32(image, params)
    assert jnp.allclose(out, ref_f32, atol=5e-2, rtol=5e-2), \
        "mismatch vs f32 JAX reference"

    # log-probs should exponentiate to a distribution
    assert jnp.allclose(jnp.sum(jnp.exp(out), axis=1), 1.0, atol=1e-3)

    print("KERNEL_OK")
</pallas_src>

<mosaic_0001>
module attributes {stable_mosaic.version = 11 : i64} {
  func.func @classifier_kernel(%arg0: i32, %arg1: memref<8x896xbf16, #tpu.memory_space<vmem>>, %arg2: memref<896x256xbf16, #tpu.memory_space<vmem>>, %arg3: memref<1x256xf32, #tpu.memory_space<vmem>>, %arg4: memref<256x256xbf16, #tpu.memory_space<vmem>>, %arg5: memref<1x256xf32, #tpu.memory_space<vmem>>, %arg6: memref<256x256xbf16, #tpu.memory_space<vmem>>, %arg7: memref<1x256xf32, #tpu.memory_space<vmem>>, %arg8: memref<256x128xbf16, #tpu.memory_space<vmem>>, %arg9: memref<1x128xf32, #tpu.memory_space<vmem>>, %arg10: memref<8x128xf32, #tpu.memory_space<vmem>>) attributes {dimension_semantics = [#tpu.dimension_semantics<parallel>], iteration_bounds = array<i64: 1>, scalar_prefetch = 0 : i64, scratch_operands = 0 : i64, tpu.core_type = #tpu.core_type<tc>, window_params = [{transform_indices = @transform_0, window_bounds = array<i64: 8, 896>}, {pipeline_mode = #tpu.pipeline_mode<synchronous>, transform_indices = @transform_1, window_bounds = array<i64: 896, 256>}, {pipeline_mode = #tpu.pipeline_mode<synchronous>, transform_indices = @transform_2, window_bounds = array<i64: 1, 256>}, {pipeline_mode = #tpu.pipeline_mode<synchronous>, transform_indices = @transform_3, window_bounds = array<i64: 256, 256>}, {pipeline_mode = #tpu.pipeline_mode<synchronous>, transform_indices = @transform_4, window_bounds = array<i64: 1, 256>}, {pipeline_mode = #tpu.pipeline_mode<synchronous>, transform_indices = @transform_5, window_bounds = array<i64: 256, 256>}, {pipeline_mode = #tpu.pipeline_mode<synchronous>, transform_indices = @transform_6, window_bounds = array<i64: 1, 256>}, {pipeline_mode = #tpu.pipeline_mode<synchronous>, transform_indices = @transform_7, window_bounds = array<i64: 256, 128>}, {pipeline_mode = #tpu.pipeline_mode<synchronous>, transform_indices = @transform_8, window_bounds = array<i64: 1, 128>}, {transform_indices = @transform_9, window_bounds = array<i64: 8, 128>}]} {
    %c0 = arith.constant 0 : index
    %c0_0 = arith.constant 0 : index
    %0 = vector.load %arg1[%c0, %c0_0] : memref<8x896xbf16, #tpu.memory_space<vmem>>, vector<8x896xbf16>
    %c0_1 = arith.constant 0 : index
    %c0_2 = arith.constant 0 : index
    %1 = vector.load %arg2[%c0_1, %c0_2] : memref<896x256xbf16, #tpu.memory_space<vmem>>, vector<896x256xbf16>
    %cst = arith.constant dense<0.000000e+00> : vector<8x256xf32>
    %2 = tpu.matmul %0, %1, %cst {dimension_numbers = #tpu.dot_dimension_numbers<[1], [0], [0], [1], [0, 0, 1, 1], [], []>} : vector<8x896xbf16>, vector<896x256xbf16>, vector<8x256xf32> -> vector<8x256xf32>
    %c0_3 = arith.constant 0 : index
    %c0_4 = arith.constant 0 : index
    %3 = vector.load %arg3[%c0_3, %c0_4] : memref<1x256xf32, #tpu.memory_space<vmem>>, vector<1x256xf32>
    %4 = vector.broadcast %3 : vector<1x256xf32> to vector<8x256xf32>
    %5 = arith.addf %2, %4 : vector<8x256xf32>
    %cst_5 = arith.constant 0.000000e+00 : f32
    %6 = vector.broadcast %cst_5 : f32 to vector<8x256xf32>
    %7 = arith.maximumf %5, %6 : vector<8x256xf32>
    %8 = arith.truncf %7 : vector<8x256xf32> to vector<8x256xbf16>
    %c0_6 = arith.constant 0 : index
    %c0_7 = arith.constant 0 : index
    %9 = vector.load %arg4[%c0_6, %c0_7] : memref<256x256xbf16, #tpu.memory_space<vmem>>, vector<256x256xbf16>
    %cst_8 = arith.constant dense<0.000000e+00> : vector<8x256xf32>
    %10 = tpu.matmul %8, %9, %cst_8 {dimension_numbers = #tpu.dot_dimension_numbers<[1], [0], [0], [1], [0, 0, 1, 1], [], []>} : vector<8x256xbf16>, vector<256x256xbf16>, vector<8x256xf32> -> vector<8x256xf32>
    %c0_9 = arith.constant 0 : index
    %c0_10 = arith.constant 0 : index
    %11 = vector.load %arg5[%c0_9, %c0_10] : memref<1x256xf32, #tpu.memory_space<vmem>>, vector<1x256xf32>
    %12 = vector.broadcast %11 : vector<1x256xf32> to vector<8x256xf32>
    %13 = arith.addf %10, %12 : vector<8x256xf32>
    %cst_11 = arith.constant 0.000000e+00 : f32
    %14 = vector.broadcast %cst_11 : f32 to vector<8x256xf32>
    %15 = arith.maximumf %13, %14 : vector<8x256xf32>
    %16 = arith.truncf %15 : vector<8x256xf32> to vector<8x256xbf16>
    %c0_12 = arith.constant 0 : index
    %c0_13 = arith.constant 0 : index
    %17 = vector.load %arg6[%c0_12, %c0_13] : memref<256x256xbf16, #tpu.memory_space<vmem>>, vector<256x256xbf16>
    %cst_14 = arith.constant dense<0.000000e+00> : vector<8x256xf32>
    %18 = tpu.matmul %16, %17, %cst_14 {dimension_numbers = #tpu.dot_dimension_numbers<[1], [0], [0], [1], [0, 0, 1, 1], [], []>} : vector<8x256xbf16>, vector<256x256xbf16>, vector<8x256xf32> -> vector<8x256xf32>
    %c0_15 = arith.constant 0 : index
    %c0_16 = arith.constant 0 : index
    %19 = vector.load %arg7[%c0_15, %c0_16] : memref<1x256xf32, #tpu.memory_space<vmem>>, vector<1x256xf32>
    %20 = vector.broadcast %19 : vector<1x256xf32> to vector<8x256xf32>
    %21 = arith.addf %18, %20 : vector<8x256xf32>
    %cst_17 = arith.constant 0.000000e+00 : f32
    %22 = vector.broadcast %cst_17 : f32 to vector<8x256xf32>
    %23 = arith.maximumf %21, %22 : vector<8x256xf32>
    %24 = arith.truncf %23 : vector<8x256xf32> to vector<8x256xbf16>
    %c0_18 = arith.constant 0 : index
    %c0_19 = arith.constant 0 : index
    %25 = vector.load %arg8[%c0_18, %c0_19] : memref<256x128xbf16, #tpu.memory_space<vmem>>, vector<256x128xbf16>
    %cst_20 = arith.constant dense<0.000000e+00> : vector<8x128xf32>
    %26 = tpu.matmul %24, %25, %cst_20 {dimension_numbers = #tpu.dot_dimension_numbers<[1], [0], [0], [1], [0, 0, 1, 1], [], []>} : vector<8x256xbf16>, vector<256x128xbf16>, vector<8x128xf32> -> vector<8x128xf32>
    %c0_21 = arith.constant 0 : index
    %c0_22 = arith.constant 0 : index
    %27 = vector.load %arg9[%c0_21, %c0_22] : memref<1x128xf32, #tpu.memory_space<vmem>>, vector<1x128xf32>
    %28 = vector.broadcast %27 : vector<1x128xf32> to vector<8x128xf32>
    %29 = arith.addf %26, %28 : vector<8x128xf32>
    %cst_23 = arith.constant dense<0xFF800000> : vector<8xf32>
    %30 = vector.multi_reduction <maximumf>, %29, %cst_23 [1] : vector<8x128xf32> to vector<8xf32>
    %31 = vector.shape_cast %30 : vector<8xf32> to vector<8x1xf32>
    %32 = vector.broadcast %31 : vector<8x1xf32> to vector<8x128xf32>
    %33 = arith.subf %29, %32 : vector<8x128xf32>
    %34 = math.exp %33 : vector<8x128xf32>
    %cst_24 = arith.constant dense<0.000000e+00> : vector<8xf32>
    %35 = vector.multi_reduction <add>, %34, %cst_24 [1] : vector<8x128xf32> to vector<8xf32>
    %36 = vector.shape_cast %35 : vector<8xf32> to vector<8x1xf32>
    %37 = math.log %36 : vector<8x1xf32>
    %38 = vector.broadcast %37 : vector<8x1xf32> to vector<8x128xf32>
    %39 = arith.subf %33, %38 : vector<8x128xf32>
    %c0_25 = arith.constant 0 : index
    %c0_26 = arith.constant 0 : index
    %40 = vector.load %arg10[%c0_25, %c0_26] : memref<8x128xf32, #tpu.memory_space<vmem>>, vector<8x128xf32>
    tpu.vector_store %arg10[%c0_25, %c0_26], %39 {strides = array<i32>} : memref<8x128xf32, #tpu.memory_space<vmem>>, vector<8x128xf32>,
    return
  }
  func.func @transform_0(%arg0: i32) -> (i32, i32) {
    %c0_i32 = arith.constant 0 : i32
    %c0_i32_0 = arith.constant 0 : i32
    return %arg0, %c0_i32 : i32, i32
  }
  func.func @transform_1(%arg0: i32) -> (i32, i32) {
    %c0_i32 = arith.constant 0 : i32
    %c0_i32_0 = arith.constant 0 : i32
    %c0_i32_1 = arith.constant 0 : i32
    return %c0_i32, %c0_i32_0 : i32, i32
  }
  func.func @transform_2(%arg0: i32) -> (i32, i32) {
    %c0_i32 = arith.constant 0 : i32
    %c0_i32_0 = arith.constant 0 : i32
    %c0_i32_1 = arith.constant 0 : i32
    return %c0_i32, %c0_i32_0 : i32, i32
  }
  func.func @transform_3(%arg0: i32) -> (i32, i32) {
    %c0_i32 = arith.constant 0 : i32
    %c0_i32_0 = arith.constant 0 : i32
    %c0_i32_1 = arith.constant 0 : i32
    return %c0_i32, %c0_i32_0 : i32, i32
  }
  func.func @transform_4(%arg0: i32) -> (i32, i32) {
    %c0_i32 = arith.constant 0 : i32
    %c0_i32_0 = arith.constant 0 : i32
    %c0_i32_1 = arith.constant 0 : i32
    return %c0_i32, %c0_i32_0 : i32, i32
  }
  func.func @transform_5(%arg0: i32) -> (i32, i32) {
    %c0_i32 = arith.constant 0 : i32
    %c0_i32_0 = arith.constant 0 : i32
    %c0_i32_1 = arith.constant 0 : i32
    return %c0_i32, %c0_i32_0 : i32, i32
  }
  func.func @transform_6(%arg0: i32) -> (i32, i32) {
    %c0_i32 = arith.constant 0 : i32
    %c0_i32_0 = arith.constant 0 : i32
    %c0_i32_1 = arith.constant 0 : i32
    return %c0_i32, %c0_i32_0 : i32, i32
  }
  func.func @transform_7(%arg0: i32) -> (i32, i32) {
    %c0_i32 = arith.constant 0 : i32
    %c0_i32_0 = arith.constant 0 : i32
    %c0_i32_1 = arith.constant 0 : i32
    return %c0_i32, %c0_i32_0 : i32, i32
  }
  func.func @transform_8(%arg0: i32) -> (i32, i32) {
    %c0_i32 = arith.constant 0 : i32
    %c0_i32_0 = arith.constant 0 : i32
    %c0_i32_1 = arith.constant 0 : i32
    return %c0_i32, %c0_i32_0 : i32, i32
  }
  func.func @transform_9(%arg0: i32) -> (i32, i32) {
    %c0_i32 = arith.constant 0 : i32
    %c0_i32_0 = arith.constant 0 : i32
    return %arg0, %c0_i32 : i32, i32
  }
}

</mosaic_0001>

<bundles_post_ra>
// kernel: tpu_custom_call.1
= control target key start
LH: loop header
LB: loop body
LE: loop exit
PB: predicated region body
PF: predicated region fallthrough
CT: control target
= control target key end

     0   :  { %14 = vsyncpa [#allocation3], 0  ;;  %s2450_s0 = inlined_call_operand.hbm [shape: bf16[8,896], index: 0, kind: input, shape index: {}]   ;;  %s2451_s1 = inlined_call_operand.hbm [shape: bf16[896,256], index: 1, kind: input, shape index: {}]   ;;  %s2452_s2 = inlined_call_operand.vmem [shape: f32[1,256], index: 2, kind: input, shape index: {}]   ;;  %s2453_s3 = inlined_call_operand.hbm [shape: bf16[256,256], index: 3, kind: input, shape index: {}]   ;;  %s2454_s4 = inlined_call_operand.vmem [shape: f32[1,256], index: 4, kind: input, shape index: {}]   ;;  %s2455_s5 = inlined_call_operand.hbm [shape: bf16[256,256], index: 5, kind: input, shape index: {}]   ;;  %s2456_s6 = inlined_call_operand.vmem [shape: f32[1,256], index: 6, kind: input, shape index: {}]   ;;  %s2457_s7 = inlined_call_operand.hbm [shape: bf16[256,128], index: 7, kind: input, shape index: {}]   ;;  %s2458_s8 = inlined_call_operand.vmem [shape: f32[1,128], index: 8, kind: input, shape index: {}]   ;;  %s2459_s9 = inlined_call_operand.hbm [shape: f32[8,128], index: 9, kind: output, shape index: {}]  }
   0x1   :  { %15 = vsyncpa [#allocation6], 0 }
   0x2   :  { %16 = vsyncpa [#allocation9], 0 }
   0x3   :  { %17 = vsyncpa [#allocation4], 0  ;;  %s2334_s30 = smov [#allocation5]  }
   0x4   :  { %s33_s10 = sshll.u32 %s2334_s30, 4  ;;  %s34_s10 = int_to_ptr.vmem [resolvable:$true] %s33_s10 }
   0x5   :  { %s2214_s11 = scalar_lea.vmem %s34_s10, 14336  ;;  %p2219_p1 = scmp.lt.s32.totalorder %s34_s10, %s34_s10 }
   0x6   :  { %p2215_p0 = scmp.ne.s32.totalorder %s34_s10, %s2214_s11  ;;  %p2220_p2 = scmp.lt.s32.totalorder %s2214_s11, %s2214_s11 }
   0x8   :  { %p2221_p3 = por %p2220_p2, %p2219_p1 }
   0xa   :  { %p2222_p4 = pnand %p2221_p3, %p2215_p0 }
   0xc   :  { %2225 = shalt.err (!%p2222_p4)
}
   0xd   :  { %s2335_s12 = smov 128   ;;  %s2336_s13 = smov 8  }
   0xe   :  { %39 = dma.hbm_to_vmem [thread:$0]  %s2451_s1, 14336, %s34_s10, [#allocation6], %s2335_s12, %s2335_s12, %s2336_s13  }
   0xf   :  { %s2337_s16 = smov [#allocation8]   ;;  %s2338_s18 = smov [#allocation2]  }
  0x10   :  { %s61_s17 = sshll.u32 %s2337_s16, 4  ;;  %s24_s19 = sshll.u32 %s2338_s18, 4  ;;  %s62_s17 = int_to_ptr.vmem [resolvable:$true] %s61_s17  ;;  %s25_s19 = int_to_ptr.vmem [resolvable:$true] %s24_s19 }
  0x11   :  { %s2234_s20 = scalar_lea.vmem %s62_s17, 4096  ;;  %p2239_p6 = scmp.lt.s32.totalorder %s62_s17, %s62_s17 }
  0x12   :  { %p2235_p5 = scmp.ne.s32.totalorder %s62_s17, %s2234_s20  ;;  %p2240_p7 = scmp.lt.s32.totalorder %s2234_s20, %s2234_s20 }
  0x14   :  { %p2241_p8 = por %p2240_p7, %p2239_p6 }
  0x16   :  { %p2242_p9 = pnand %p2241_p8, %p2235_p5 }
  0x18   :  { %2245 = shalt.err (!%p2242_p9)
}
  0x19   :  { %67 = dma.hbm_to_vmem [thread:$0]  %s2455_s5, 4096, %s62_s17, [#allocation9], %s2335_s12, %s2335_s12, %s2336_s13  }
  0x1a   :  { %s2254_s1 = scalar_lea.vmem %s25_s19, 448  ;;  %p2259_p11 = scmp.lt.s32.totalorder %s25_s19, %s25_s19 }
  0x1b   :  { %p2255_p10 = scmp.ne.s32.totalorder %s25_s19, %s2254_s1  ;;  %p2260_p12 = scmp.lt.s32.totalorder %s2254_s1, %s2254_s1 }
  0x1d   :  { %p2261_p13 = por %p2260_p12, %p2259_p11 }
  0x1f   :  { %p2262_p0 = pnand %p2261_p13, %p2255_p10 }
  0x21   :  { %2265 = shalt.err (!%p2262_p0)
}
  0x22   :  { %27 = dma.hbm_to_vmem [thread:$0]  %s2450_s0, 448, %s25_s19, [#allocation3]  }
  0x23   :  { %s2339_s25 = smov [#allocation7]   ;;  %s2340_s27 = smov [#allocation10]  }
  0x24   :  { %s47_s26 = sshll.u32 %s2339_s25, 4  ;;  %s75_s28 = sshll.u32 %s2340_s27, 4  ;;  %s48_s26 = int_to_ptr.vmem [resolvable:$true] %s47_s26  ;;  %s76_s28 = int_to_ptr.vmem [resolvable:$true] %s75_s28 }
  0x25   :  { %s2274_s29 = scalar_lea.vmem %s48_s26, 4096  ;;  %p2279_p2 = scmp.lt.s32.totalorder %s48_s26, %s48_s26 }
  0x26   :  { %p2275_p1 = scmp.ne.s32.totalorder %s48_s26, %s2274_s29  ;;  %p2280_p3 = scmp.lt.s32.totalorder %s2274_s29, %s2274_s29 }
  0x28   :  { %p2281_p4 = por %p2280_p3, %p2279_p2 }
  0x2a   :  { %p2282_p5 = pnand %p2281_p4, %p2275_p1 }
  0x2c   :  { %2285 = shalt.err (!%p2282_p5)
}
  0x2d   :  { %53 = dma.hbm_to_vmem [thread:$0]  %s2453_s3, 4096, %s48_s26, [#allocation6], %s2335_s12, %s2335_s12, %s2336_s13  }
  0x2e   :  { %s2294_s0 = scalar_lea.vmem %s76_s28, 2048  ;;  %p2299_p7 = scmp.lt.s32.totalorder %s76_s28, %s76_s28 }
  0x2f   :  { %p2295_p6 = scmp.ne.s32.totalorder %s76_s28, %s2294_s0  ;;  %p2300_p8 = scmp.lt.s32.totalorder %s2294_s0, %s2294_s0 }
  0x31   :  { %p2301_p9 = por %p2300_p8, %p2299_p7 }
  0x33   :  { %p2302_p10 = pnand %p2301_p9, %p2295_p6 }
  0x35   :  { %2305 = shalt.err (!%p2302_p10)
}
  0x36   :  { %s2341_s10 = smov 64   ;;  %s2342_s11 = smov 4  }
  0x37   :  { %81 = dma.hbm_to_vmem [thread:$0]  %s2457_s7, 2048, %s76_s28, [#allocation9], %s2341_s10, %s2341_s10, %s2342_s11  }
  0x38   :  { %2326 = dma.done.wait [#allocation3], 448  }
  0x39   :  { %2327 = vsyncadd [#allocation3], 4294966848 }
  0x3a   :  { %2328 = dma.done.wait [#allocation6], 18432  }
  0x3b   :  { %2329 = vsyncadd [#allocation6], 4294948864 }
  0x3c   :  { %2330 = dma.done.wait [#allocation9], 6144  }
  0x3d   :  { %2331 = vsyncadd [#allocation9], 4294961152  ;;  %v1915_v0 = vld [vmem:[#allocation5 + $0x74] ss:$8 sps:$4 sm:$0xff]   ;;  %v1917_v1 = vld [vmem:[#allocation5 + $0x70] ss:$8 sps:$4 sm:$0xff]  }
  0x3e   :  { %813 = vmatprep.subr.bf16.mxu0 %v1915_v0  ;;  %v1918_v2 = vld [vmem:[#allocation5 + $0x174] ss:$8 sps:$4 sm:$0xff]   ;;  %v1920_v3 = vld [vmem:[#allocation5 + $0x170] ss:$8 sps:$4 sm:$0xff]   ;;  %v1921_v4 = vld [vmem:[#allocation5 + $0x64] ss:$8 sps:$4 sm:$0xff]  }
  0x3f   :  { %814 = vmatpush1.bf16.msra.mxu0 %v1917_v1  ;;  %v1923_v5 = vld [vmem:[#allocation5 + $0x60] ss:$8 sps:$4 sm:$0xff]   ;;  %854 = vmatprep.subr.bf16.mxu1 %v1918_v2  ;;  %v1924_v6 = vld [vmem:[#allocation5 + $0x164] ss:$8 sps:$4 sm:$0xff]   ;;  %v1927_v8 = vld [vmem:[#allocation5 + $0x54] ss:$8 sps:$4 sm:$0xff]  }
  0x40   :  { %855 = vmatpush1.bf16.msra.mxu1 %v1920_v3  ;;  %815 = vmatprep.subr.bf16.mxu0 %v1921_v4  ;;  %v1926_v7 = vld [vmem:[#allocation5 + $0x160] ss:$8 sps:$4 sm:$0xff]   ;;  %v1929_v9 = vld [vmem:[#allocation5 + $0x50] ss:$8 sps:$4 sm:$0xff]   ;;  %v1930_v10 = vld [vmem:[#allocation5 + $0x154] ss:$8 sps:$4 sm:$0xff]  }
  0x41   :  { %856 = vmatprep.subr.bf16.mxu1 %v1924_v6  ;;  %v1933_v11 = vld [vmem:[#allocation5 + $0x44] ss:$8 sps:$4 sm:$0xff]   ;;  %v1932_v12 = vld [vmem:[#allocation5 + $0x150] ss:$8 sps:$4 sm:$0xff]   ;;  %v1935_v14 = vld [vmem:[#allocation5 + $0x40] ss:$8 sps:$4 sm:$0xff]  }
  0x42   :  { %v1936_v13 = vld [vmem:[#allocation5 + $0x144] ss:$8 sps:$4 sm:$0xff]   ;;  %v1939_v15 = vld [vmem:[#allocation5 + $0x34] ss:$8 sps:$4 sm:$0xff]   ;;  %v1938_v16 = vld [vmem:[#allocation5 + $0x140] ss:$8 sps:$4 sm:$0xff]  }
  0x43   :  { %816 = vmatpush1.bf16.msra.mxu0 %v1923_v5  ;;  %v1942_v17 = vld [vmem:[#allocation5 + $0x134] ss:$8 sps:$4 sm:$0xff]   ;;  %v1941_v18 = vld [vmem:[#allocation5 + $0x30] ss:$8 sps:$4 sm:$0xff]   ;;  %v1945_v19 = vld [vmem:[#allocation5 + $0x24] ss:$8 sps:$4 sm:$0xff]  }
  0x44   :  { %817 = vmatprep.subr.bf16.mxu0 %v1927_v8  ;;  %857 = vmatpush1.bf16.msra.mxu1 %v1926_v7  ;;  %v1944_v20 = vld [vmem:[#allocation5 + $0x130] ss:$8 sps:$4 sm:$0xff]   ;;  %v1948_v21 = vld [vmem:[#allocation5 + $0x124] ss:$8 sps:$4 sm:$0xff]   ;;  %v1947_v22 = vld [vmem:[#allocation5 + $0x20] ss:$8 sps:$4 sm:$0xff]  }
  0x45   :  { %858 = vmatprep.subr.bf16.mxu1 %v1930_v10  ;;  %v1951_v23 = vld [vmem:[#allocation5 + $0x14] ss:$8 sps:$4 sm:$0xff]   ;;  %v1950_v24 = vld [vmem:[#allocation5 + $0x120] ss:$8 sps:$4 sm:$0xff]   ;;  %v1953_v26 = vld [vmem:[#allocation5 + $0x10] ss:$8 sps:$4 sm:$0xff]  }
  0x46   :  { %v1954_v25 = vld [vmem:[#allocation5 + $0x114] ss:$8 sps:$4 sm:$0xff]   ;;  %v1957_v27 = vld [vmem:[#allocation5 + $0x4] ss:$8 sps:$4 sm:$0xff]   ;;  %v1956_v28 = vld [vmem:[#allocation5 + $0x110] ss:$8 sps:$4 sm:$0xff]  }
  0x47   :  { %818 = vmatpush1.bf16.msra.mxu0 %v1929_v9  ;;  %v1960_v29 = vld [vmem:[#allocation5 + $0x104] ss:$8 sps:$4 sm:$0xff]   ;;  %v1959_v30 = vld [vmem:[#allocation5] ss:$8 sps:$4 sm:$0xff]   ;;  %v1963_v31 = vld [vmem:[#allocation5 + $0xf4] ss:$8 sps:$4 sm:$0xff]  }
  0x48   :  { %819 = vmatprep.subr.bf16.mxu0 %v1933_v11  ;;  %859 = vmatpush1.bf16.msra.mxu1 %v1932_v12  ;;  %v1962_v32 = vld [vmem:[#allocation5 + $0x100] ss:$8 sps:$4 sm:$0xff]   ;;  %v1966_v33 = vld [vmem:[#allocation5 + $0x1f4] ss:$8 sps:$4 sm:$0xff]   ;;  %v1965_v34 = vld [vmem:[#allocation5 + $0xf0] ss:$8 sps:$4 sm:$0xff]  }
  0x49   :  { %860 = vmatprep.subr.bf16.mxu1 %v1936_v13  ;;  %v1969_v35 = vld [vmem:[#allocation5 + $0xe4] ss:$8 sps:$4 sm:$0xff]   ;;  %v1968_v36 = vld [vmem:[#allocation5 + $0x1f0] ss:$8 sps:$4 sm:$0xff]   ;;  %v1971_v38 = vld [vmem:[#allocation5 + $0xe0] ss:$8 sps:$4 sm:$0xff]  }
  0x4a   :  { %v1972_v37 = vld [vmem:[#allocation5 + $0x1e4] ss:$8 sps:$4 sm:$0xff]   ;;  %v1975_v39 = vld [vmem:[#allocation5 + $0xd4] ss:$8 sps:$4 sm:$0xff]   ;;  %v1974_v40 = vld [vmem:[#allocation5 + $0x1e0] ss:$8 sps:$4 sm:$0xff]  }
  0x4b   :  { %820 = vmatpush1.bf16.msra.mxu0 %v1935_v14  ;;  %v1978_v41 = vld [vmem:[#allocation5 + $0x1d4] ss:$8 sps:$4 sm:$0xff]   ;;  %v1977_v42 = vld [vmem:[#allocation5 + $0xd0] ss:$8 sps:$4 sm:$0xff]   ;;  %v1981_v43 = vld [vmem:[#allocation5 + $0xc4] ss:$8 sps:$4 sm:$0xff]  }
  0x4c   :  { %821 = vmatprep.subr.bf16.mxu0 %v1939_v15  ;;  %861 = vmatpush1.bf16.msra.mxu1 %v1938_v16  ;;  %v1980_v44 = vld [vmem:[#allocation5 + $0x1d0] ss:$8 sps:$4 sm:$0xff]   ;;  %v1984_v45 = vld [vmem:[#allocation5 + $0x1c4] ss:$8 sps:$4 sm:$0xff]   ;;  %v1983_v47 = vld [vmem:[#allocation5 + $0xc0] ss:$8 sps:$4 sm:$0xff]  }
  0x4d   :  { %862 = vmatprep.subr.bf16.mxu1 %v1942_v17  ;;  %v100_v46 = vld [vmem:[#allocation2] sm:$0xff]  ;;  %v1987_v49 = vld [vmem:[#allocation5 + $0xb4] ss:$8 sps:$4 sm:$0xff]   ;;  %v101_v50 = vld [vmem:[#allocation2 + $0x8] sm:$0xff]  ;;  %v2343_v15 = vmov 0   ;;  %s2344_s17 = smov [#allocation11]  }
  0x4e   :  { %v1683_v48 = vcombine.high %v100_v46, %v100_v46  ;;  %v1986_v51 = vld [vmem:[#allocation5 + $0x1c0] ss:$8 sps:$4 sm:$0xff]   ;;  %v1685_v52 = vcombine.high %v101_v50, %v101_v50  ;;  %v1990_v53 = vld [vmem:[#allocation5 + $0x1b4] ss:$8 sps:$4 sm:$0xff]   ;;  %v1989_v54 = vld [vmem:[#allocation5 + $0xb0] ss:$8 sps:$4 sm:$0xff]   ;;  %v1682_v5 = vcombine.low %v100_v46, %v100_v46  ;;  %v1684_v8 = vcombine.low %v101_v50, %v101_v50 }
  0x4f   :  { %822 = vmatpush1.bf16.msra.mxu0 %v1941_v18  ;;  %v1993_v55 = vld [vmem:[#allocation5 + $0xa4] ss:$8 sps:$4 sm:$0xff]   ;;  %v1992_v56 = vld [vmem:[#allocation5 + $0x1b0] ss:$8 sps:$4 sm:$0xff]   ;;  %v1995_v58 = vld [vmem:[#allocation5 + $0xa0] ss:$8 sps:$4 sm:$0xff]  }
  0x50   :  { %823 = vmatprep.subr.bf16.mxu0 %v1945_v19  ;;  %863 = vmatpush1.bf16.msra.mxu1 %v1944_v20  ;;  %v1996_v57 = vld [vmem:[#allocation5 + $0x1a4] ss:$8 sps:$4 sm:$0xff]   ;;  %v1999_v59 = vld [vmem:[#allocation5 + $0x94] ss:$8 sps:$4 sm:$0xff]   ;;  %v1998_v60 = vld [vmem:[#allocation5 + $0x1a0] ss:$8 sps:$4 sm:$0xff]  }
  0x51   :  { %864 = vmatprep.subr.bf16.mxu1 %v1948_v21  ;;  %845 = vmatprep.mubr.bf16.mxu0 %v1683_v48  ;;  %v2002_v61 = vld [vmem:[#allocation5 + $0x194] ss:$8 sps:$4 sm:$0xff]   ;;  %v2001_v62 = vld [vmem:[#allocation5 + $0x90] ss:$8 sps:$4 sm:$0xff]   ;;  %v2005_v63 = vld [vmem:[#allocation5 + $0x84] ss:$8 sps:$4 sm:$0xff]  }
  0x52   :  { %886 = vmatprep.mubr.bf16.mxu1 %v1685_v52  ;;  %v2004_v0 = vld [vmem:[#allocation5 + $0x190] ss:$8 sps:$4 sm:$0xff]   ;;  %v2008_v1 = vld [vmem:[#allocation5 + $0x184] ss:$8 sps:$4 sm:$0xff]   ;;  %v2007_v2 = vld [vmem:[#allocation5 + $0x80] ss:$8 sps:$4 sm:$0xff]  }
  0x53   :  { %824 = vmatpush1.bf16.msra.mxu0 %v1947_v22  ;;  %v2015_v3 = vld [vmem:[#allocation5 + $0x274] ss:$8 sps:$4 sm:$0xff]   ;;  %v2012_v4 = vld [vmem:[#allocation5 + $0x180] ss:$8 sps:$4 sm:$0xff]   ;;  %v2013_v7 = vld [vmem:[#allocation5 + $0x270] ss:$8 sps:$4 sm:$0xff]  }
  0x54   :  { %825 = vmatprep.subr.bf16.mxu0 %v1951_v23  ;;  %865 = vmatpush1.bf16.msra.mxu1 %v1950_v24  ;;  %v2041_v6 = vld [vmem:[#allocation5 + $0x374] ss:$8 sps:$4 sm:$0xff]   ;;  %v2020_v9 = vld [vmem:[#allocation5 + $0x264] ss:$8 sps:$4 sm:$0xff]   ;;  %v2039_v10 = vld [vmem:[#allocation5 + $0x370] ss:$8 sps:$4 sm:$0xff]  }
  0x55   :  { %866 = vmatprep.subr.bf16.mxu1 %v1954_v25  ;;  %v2047_v11 = vld [vmem:[#allocation5 + $0x364] ss:$8 sps:$4 sm:$0xff]   ;;  %v2018_v12 = vld [vmem:[#allocation5 + $0x260] ss:$8 sps:$4 sm:$0xff]   ;;  %v2023_v13 = vld [vmem:[#allocation5 + $0x254] ss:$8 sps:$4 sm:$0xff]  }
  0x56   :  { %v2045_v14 = vld [vmem:[#allocation5 + $0x360] ss:$8 sps:$4 sm:$0xff]   ;;  %v2053_v16 = vld [vmem:[#allocation5 + $0x354] ss:$8 sps:$4 sm:$0xff]   ;;  %v2021_v17 = vld [vmem:[#allocation5 + $0x250] ss:$8 sps:$4 sm:$0xff]  }
  0x57   :  { %826 = vmatpush1.bf16.msra.mxu0 %v1953_v26  ;;  %v2026_v18 = vld [vmem:[#allocation5 + $0x244] ss:$8 sps:$4 sm:$0xff]   ;;  %v2024_v19 = vld [vmem:[#allocation5 + $0x240] ss:$8 sps:$4 sm:$0xff]   ;;  %v2051_v20 = vld [vmem:[#allocation5 + $0x350] ss:$8 sps:$4 sm:$0xff]  }
  0x58   :  { %827 = vmatprep.subr.bf16.mxu0 %v1957_v27  ;;  %867 = vmatpush1.bf16.msra.mxu1 %v1956_v28  ;;  %v2059_v21 = vld [vmem:[#allocation5 + $0x344] ss:$8 sps:$4 sm:$0xff]   ;;  %v2029_v22 = vld [vmem:[#allocation5 + $0x234] ss:$8 sps:$4 sm:$0xff]   ;;  %v2057_v23 = vld [vmem:[#allocation5 + $0x340] ss:$8 sps:$4 sm:$0xff]  }
  0x59   :  { %868 = vmatprep.subr.bf16.mxu1 %v1960_v29  ;;  %v2065_v24 = vld [vmem:[#allocation5 + $0x334] ss:$8 sps:$4 sm:$0xff]   ;;  %v2027_v26 = vld [vmem:[#allocation5 + $0x230] ss:$8 sps:$4 sm:$0xff]   ;;  %v2032_v28 = vld [vmem:[#allocation5 + $0x224] ss:$8 sps:$4 sm:$0xff]  }
  0x5a   :  { %v2419_v25 = vld [vmem:[#allocation2 + $0x10] sm:$0xff]  ;;  %v2062_v48 = vld [vmem:[#allocation5 + $0x2c4] ss:$8 sps:$4 sm:$0xff]   ;;  %s1671_s18 = sshll.u32 %s2344_s17, 4  ;;  %s1672_s18 = int_to_ptr.vmem [resolvable:$true] %s1671_s18 }
  0x5b   :  { %828 = vmatpush1.bf16.msra.mxu0 %v1959_v30  ;;  %v1687_v27 = vcombine.high %v2419_v25, %v2419_v25  ;;  %v2063_v29 = vld [vmem:[#allocation5 + $0x330] ss:$8 sps:$4 sm:$0xff]   ;;  %v2071_v30 = vld [vmem:[#allocation5 + $0x324] ss:$8 sps:$4 sm:$0xff]   ;;  %v2056_v46 = vld [vmem:[#allocation5 + $0x2d4] ss:$8 sps:$4 sm:$0xff]   ;;  %p2311_p12 = scmp.lt.s32.totalorder %s1672_s18, %s1672_s18 }
  0x5c   :  { %829 = vmatprep.subr.bf16.mxu0 %v1963_v31  ;;  %869 = vmatpush1.bf16.msra.mxu1 %v1962_v32  ;;  %v2030_v31 = vld [vmem:[#allocation5 + $0x220] ss:$8 sps:$4 sm:$0xff]   ;;  %v2035_v32 = vld [vmem:[#allocation5 + $0x214] ss:$8 sps:$4 sm:$0xff]   ;;  %v2074_v52 = vld [vmem:[#allocation5 + $0x2a4] ss:$8 sps:$4 sm:$0xff]  }
  0x5d   :  { %870 = vmatprep.subr.bf16.mxu1 %v1966_v33  ;;  %v2069_v33 = vld [vmem:[#allocation5 + $0x320] ss:$8 sps:$4 sm:$0xff]   ;;  %v2068_v50 = vld [vmem:[#allocation5 + $0x2b4] ss:$8 sps:$4 sm:$0xff]  }
  0x5f   :  { %830 = vmatpush2.bf16.msra.mxu0 %v1965_v34  ;;  %v2077_v34 = vld [vmem:[#allocation5 + $0x314] ss:$8 sps:$4 sm:$0xff]  }
  0x60   :  { %831 = vmatprep.subr.bf16.mxu0 %v1969_v35  ;;  %871 = vmatpush2.bf16.msra.mxu1 %v1968_v36  ;;  %v2033_v35 = vld [vmem:[#allocation5 + $0x210] ss:$8 sps:$4 sm:$0xff]   ;;  %v2038_v36 = vld [vmem:[#allocation5 + $0x204] ss:$8 sps:$4 sm:$0xff]  }
  0x61   :  { %872 = vmatprep.subr.bf16.mxu1 %v1972_v37  ;;  %v2075_v37 = vld [vmem:[#allocation5 + $0x310] ss:$8 sps:$4 sm:$0xff]  }
  0x63   :  { %832 = vmatpush2.bf16.msra.mxu0 %v1971_v38  ;;  %v2083_v38 = vld [vmem:[#allocation5 + $0x304] ss:$8 sps:$4 sm:$0xff]  }
  0x64   :  { %833 = vmatprep.subr.bf16.mxu0 %v1975_v39  ;;  %873 = vmatpush2.bf16.msra.mxu1 %v1974_v40  ;;  %v2036_v39 = vld [vmem:[#allocation5 + $0x200] ss:$8 sps:$4 sm:$0xff]   ;;  %v2044_v40 = vld [vmem:[#allocation5 + $0x2f4] ss:$8 sps:$4 sm:$0xff]  }
  0x65   :  { %874 = vmatprep.subr.bf16.mxu1 %v1978_v41  ;;  %v2081_v41 = vld [vmem:[#allocation5 + $0x300] ss:$8 sps:$4 sm:$0xff]  }
  0x67   :  { %834 = vmatpush2.bf16.msra.mxu0 %v1977_v42  ;;  %v2042_v42 = vld [vmem:[#allocation5 + $0x2f0] ss:$8 sps:$4 sm:$0xff]  }
  0x68   :  { %835 = vmatprep.subr.bf16.mxu0 %v1981_v43  ;;  %875 = vmatpush2.bf16.msra.mxu1 %v1980_v44  ;;  %v2050_v43 = vld [vmem:[#allocation5 + $0x2e4] ss:$8 sps:$4 sm:$0xff]   ;;  %v2087_v44 = vld [vmem:[#allocation2 + $0x18] ss:$0 sps:$4 sm:$0xff]  }
  0x69   :  { %876 = vmatprep.subr.bf16.mxu1 %v1984_v45  ;;  %v2048_v45 = vld [vmem:[#allocation5 + $0x2e0] ss:$8 sps:$4 sm:$0xff]  }
  0x6b   :  { %836 = vmatpush2.bf16.msra.mxu0 %v1983_v47  ;;  %v2054_v47 = vld [vmem:[#allocation5 + $0x2d0] ss:$8 sps:$4 sm:$0xff]  }
  0x6c   :  { %837 = vmatprep.subr.bf16.mxu0 %v1987_v49  ;;  %877 = vmatpush2.bf16.msra.mxu1 %v1986_v51  ;;  %v2060_v49 = vld [vmem:[#allocation5 + $0x2c0] ss:$8 sps:$4 sm:$0xff]   ;;  %v2066_v51 = vld [vmem:[#allocation5 + $0x2b0] ss:$8 sps:$4 sm:$0xff]  }
  0x6d   :  { %878 = vmatprep.subr.bf16.mxu1 %v1990_v53  ;;  %v2072_v53 = vld [vmem:[#allocation5 + $0x2a0] ss:$8 sps:$4 sm:$0xff]  }
  0x6f   :  { %838 = vmatpush2.bf16.msra.mxu0 %v1989_v54  ;;  %v2080_v54 = vld [vmem:[#allocation5 + $0x294] ss:$8 sps:$4 sm:$0xff]  }
  0x70   :  { %839 = vmatprep.subr.bf16.mxu0 %v1993_v55  ;;  %879 = vmatpush2.bf16.msra.mxu1 %v1992_v56  ;;  %v2078_v55 = vld [vmem:[#allocation5 + $0x290] ss:$8 sps:$4 sm:$0xff]   ;;  %v2086_v56 = vld [vmem:[#allocation5 + $0x284] ss:$8 sps:$4 sm:$0xff]  }
  0x71   :  { %880 = vmatprep.subr.bf16.mxu1 %v1996_v57  ;;  %v2084_v57 = vld [vmem:[#allocation5 + $0x280] ss:$8 sps:$4 sm:$0xff]  }
  0x73   :  { %840 = vmatpush2.bf16.msra.mxu0 %v1995_v58  ;;  %v1686_v58 = vcombine.low %v2419_v25, %v2419_v25  ;;  %v2137_v25 = vld [vmem:[#allocation7 + $0x84] ss:$8 sps:$4 sm:$0xff]  }
  0x74   :  { %841 = vmatprep.subr.bf16.mxu0 %v1999_v59  ;;  %881 = vmatpush2.bf16.msra.mxu1 %v1998_v60  ;;  %v2090_v59 = vld [vmem:[#allocation7 + $0x70] ss:$8 sps:$4 sm:$0xff]   ;;  %v2092_v60 = vld [vmem:[#allocation7 + $0x74] ss:$8 sps:$4 sm:$0xff]  }
  0x75   :  { %882 = vmatprep.subr.bf16.mxu1 %v2002_v61  ;;  %v2095_v61 = vld [vmem:[#allocation7 + $0x64] ss:$8 sps:$4 sm:$0xff]  }
  0x77   :  { %842 = vmatpush2.bf16.msra.mxu0 %v2001_v62  ;;  %v2093_v62 = vld [vmem:[#allocation7 + $0x60] ss:$8 sps:$4 sm:$0xff]  }
  0x78   :  { %843 = vmatprep.subr.bf16.mxu0 %v2005_v63  ;;  %883 = vmatpush2.bf16.msra.mxu1 %v2004_v0  ;;  %v2098_v63 = vld [vmem:[#allocation7 + $0x54] ss:$8 sps:$4 sm:$0xff]   ;;  %v2096_v0 = vld [vmem:[#allocation7 + $0x50] ss:$8 sps:$4 sm:$0xff]  }
  0x79   :  { %884 = vmatprep.subr.bf16.mxu1 %v2008_v1  ;;  %v2101_v1 = vld [vmem:[#allocation7 + $0x44] ss:$8 sps:$4 sm:$0xff]  }
  0x7b   :  { %844 = vmatpush2.bf16.msra.mxu0 %v2007_v2  ;;  %v2099_v2 = vld [vmem:[#allocation7 + $0x40] ss:$8 sps:$4 sm:$0xff]  }
  0x7c   :  { %895 = vmatprep.subr.bf16.mxu0 %v2015_v3  ;;  %885 = vmatpush2.bf16.msra.mxu1 %v2012_v4  ;;  %v2104_v3 = vld [vmem:[#allocation7 + $0x34] ss:$8 sps:$4 sm:$0xff]   ;;  %v2102_v4 = vld [vmem:[#allocation7 + $0x30] ss:$8 sps:$4 sm:$0xff]  }
  0x7d   :  { %936 = vmatprep.subr.bf16.mxu1 %v2041_v6  ;;  %v2105_v6 = vld [vmem:[#allocation7 + $0x20] ss:$8 sps:$4 sm:$0xff]  }
  0x7e   :  { %846 = vmatmul.mubr.bf16.vlgmr.msra.gmra.mxu0 %v1682_v5  ;;  %v2107_v5 = vld [vmem:[#allocation7 + $0x24] ss:$8 sps:$4 sm:$0xff]  }
  0x7f   :  { %896 = vmatpush1.bf16.msra.mxu0 %v2013_v7  ;;  %887 = vmatmul.mubr.bf16.vlgmr.msra.gmra.mxu1 %v1684_v8  ;;  %v2110_v7 = vld [vmem:[#allocation7 + $0x14] ss:$8 sps:$4 sm:$0xff]   ;;  %v2108_v8 = vld [vmem:[#allocation7 + $0x10] ss:$8 sps:$4 sm:$0xff]  }
  0x80   :  { %897 = vmatprep.subr.bf16.mxu0 %v2020_v9  ;;  %937 = vmatpush1.bf16.msra.mxu1 %v2039_v10  ;;  %v2113_v9 = vld [vmem:[#allocation7 + $0x4] ss:$8 sps:$4 sm:$0xff]   ;;  %v2111_v10 = vld [vmem:[#allocation7] ss:$8 sps:$4 sm:$0xff]  }
  0x81   :  { %968 = vmatprep.mubr.bf16.mxu1 %v2343_v15  ;;  %938 = vmatprep.subr.bf16.mxu1 %v2047_v11  ;;  %v2116_v11 = vld [vmem:[#allocation7 + $0xf4] ss:$8 sps:$4 sm:$0xff]  }
  0x82   :  { %927 = vmatprep.mubr.bf16.mxu0 %v1687_v27  ;;  %v2122_v15 = vld [vmem:[#allocation7 + $0xd4] ss:$8 sps:$4 sm:$0xff]   ;;  %v2138_v27 = vld [vmem:[#allocation8 + $0x70] ss:$8 sps:$4 sm:$0xff]  }
  0x83   :  { %898 = vmatpush1.bf16.msra.mxu0 %v2018_v12  ;;  %v2114_v12 = vld [vmem:[#allocation7 + $0xf0] ss:$8 sps:$4 sm:$0xff]  }
  0x84   :  { %899 = vmatprep.subr.bf16.mxu0 %v2023_v13  ;;  %939 = vmatpush1.bf16.msra.mxu1 %v2045_v14  ;;  %v2119_v13 = vld [vmem:[#allocation7 + $0xe4] ss:$8 sps:$4 sm:$0xff]   ;;  %v2117_v14 = vld [vmem:[#allocation7 + $0xe0] ss:$8 sps:$4 sm:$0xff]  }
  0x85   :  { %940 = vmatprep.subr.bf16.mxu1 %v2053_v16  ;;  %v2120_v16 = vld [vmem:[#allocation7 + $0xd0] ss:$8 sps:$4 sm:$0xff]  }
  0x87   :  { %900 = vmatpush1.bf16.msra.mxu0 %v2021_v17  ;;  %v2125_v17 = vld [vmem:[#allocation7 + $0xc4] ss:$8 sps:$4 sm:$0xff]  }
  0x88   :  { %901 = vmatprep.subr.bf16.mxu0 %v2026_v18  ;;  %941 = vmatpush1.bf16.msra.mxu1 %v2051_v20  ;;  %v2123_v18 = vld [vmem:[#allocation7 + $0xc0] ss:$8 sps:$4 sm:$0xff]   ;;  %v2126_v20 = vld [vmem:[#allocation7 + $0xb0] ss:$8 sps:$4 sm:$0xff]  }
  0x89   :  { %942 = vmatprep.subr.bf16.mxu1 %v2059_v21  ;;  %v2131_v21 = vld [vmem:[#allocation7 + $0xa4] ss:$8 sps:$4 sm:$0xff]  }
  0x8b   :  { %902 = vmatpush1.bf16.msra.mxu0 %v2024_v19  ;;  %v2128_v19 = vld [vmem:[#allocation7 + $0xb4] ss:$8 sps:$4 sm:$0xff]  }
  0x8c   :  { %903 = vmatprep.subr.bf16.mxu0 %v2029_v22  ;;  %943 = vmatpush1.bf16.msra.mxu1 %v2057_v23  ;;  %v2129_v22 = vld [vmem:[#allocation7 + $0xa0] ss:$8 sps:$4 sm:$0xff]   ;;  %v2134_v23 = vld [vmem:[#allocation7 + $0x94] ss:$8 sps:$4 sm:$0xff]  }
  0x8d   :  { %944 = vmatprep.subr.bf16.mxu1 %v2065_v24  ;;  %v2132_v24 = vld [vmem:[#allocation7 + $0x90] ss:$8 sps:$4 sm:$0xff]  }
  0x8f   :  { %904 = vmatpush1.bf16.msra.mxu0 %v2027_v26  ;;  %v2135_v26 = vld [vmem:[#allocation7 + $0x80] ss:$8 sps:$4 sm:$0xff]  }
  0x90   :  { %905 = vmatprep.subr.bf16.mxu0 %v2032_v28  ;;  %945 = vmatpush1.bf16.msra.mxu1 %v2063_v29  ;;  %v2140_v28 = vld [vmem:[#allocation8 + $0x74] ss:$8 sps:$4 sm:$0xff]   ;;  %v2143_v29 = vld [vmem:[#allocation8 + $0x64] ss:$8 sps:$4 sm:$0xff]  }
  0x91   :  { %946 = vmatprep.subr.bf16.mxu1 %v2071_v30  ;;  %v2141_v30 = vld [vmem:[#allocation8 + $0x60] ss:$8 sps:$4 sm:$0xff]  }
  0x93   :  { %906 = vmatpush1.bf16.msra.mxu0 %v2030_v31  ;;  %v2146_v31 = vld [vmem:[#allocation8 + $0x54] ss:$8 sps:$4 sm:$0xff]  }
  0x94   :  { %907 = vmatprep.subr.bf16.mxu0 %v2035_v32  ;;  %947 = vmatpush1.bf16.msra.mxu1 %v2069_v33  ;;  %v2144_v32 = vld [vmem:[#allocation8 + $0x50] ss:$8 sps:$4 sm:$0xff]   ;;  %v2149_v33 = vld [vmem:[#allocation8 + $0x44] ss:$8 sps:$4 sm:$0xff]  }
  0x95   :  { %948 = vmatprep.subr.bf16.mxu1 %v2077_v34  ;;  %v2147_v34 = vld [vmem:[#allocation8 + $0x40] ss:$8 sps:$4 sm:$0xff]  }
  0x97   :  { %908 = vmatpush1.bf16.msra.mxu0 %v2033_v35  ;;  %v2152_v35 = vld [vmem:[#allocation8 + $0x34] ss:$8 sps:$4 sm:$0xff]  }
  0x98   :  { %909 = vmatprep.subr.bf16.mxu0 %v2038_v36  ;;  %949 = vmatpush1.bf16.msra.mxu1 %v2075_v37  ;;  %v2150_v36 = vld [vmem:[#allocation8 + $0x30] ss:$8 sps:$4 sm:$0xff]   ;;  %v2155_v37 = vld [vmem:[#allocation8 + $0x24] ss:$8 sps:$4 sm:$0xff]  }
  0x99   :  { %950 = vmatprep.subr.bf16.mxu1 %v2083_v38  ;;  %v2153_v38 = vld [vmem:[#allocation8 + $0x20] ss:$8 sps:$4 sm:$0xff]  }
  0x9b   :  { %910 = vmatpush1.bf16.msra.mxu0 %v2036_v39  ;;  %v2158_v39 = vld [vmem:[#allocation8 + $0x14] ss:$8 sps:$4 sm:$0xff]  }
  0x9c   :  { %911 = vmatprep.subr.bf16.mxu0 %v2044_v40  ;;  %951 = vmatpush1.bf16.msra.mxu1 %v2081_v41  ;;  %v2156_v40 = vld [vmem:[#allocation8 + $0x10] ss:$8 sps:$4 sm:$0xff]   ;;  %v2161_v41 = vld [vmem:[#allocation8 + $0x4] ss:$8 sps:$4 sm:$0xff]  }
  0x9d   :  { %1185 = vmatprep.subr.bf16.mxu1 %v2092_v60 }
  0x9f   :  { %912 = vmatpush2.bf16.msra.mxu0 %v2042_v42  ;;  %969 = vmatmul.mubr.bf16.vlgmr.msra.gmra.mxu1 %v2087_v44  ;;  %v2159_v42 = vld [vmem:[#allocation8] ss:$8 sps:$4 sm:$0xff]   ;;  %v2162_v44 = vld [vmem:[#allocation8 + $0xf0] ss:$8 sps:$4 sm:$0xff]  }
  0xa0   :  { %913 = vmatprep.subr.bf16.mxu0 %v2050_v43  ;;  %1186 = vmatpush1.bf16.msra.mxu1 %v2090_v59  ;;  %v2164_v43 = vld [vmem:[#allocation8 + $0xf4] ss:$8 sps:$4 sm:$0xff]  }
  0xa1   :  { %1187 = vmatprep.subr.bf16.mxu1 %v2095_v61 }
  0xa3   :  { %914 = vmatpush2.bf16.msra.mxu0 %v2048_v45  ;;  %v2167_v45 = vld [vmem:[#allocation8 + $0xe4] ss:$8 sps:$4 sm:$0xff]  }
  0xa4   :  { %915 = vmatprep.subr.bf16.mxu0 %v2056_v46  ;;  %1188 = vmatpush1.bf16.msra.mxu1 %v2093_v62  ;;  %v2165_v46 = vld [vmem:[#allocation8 + $0xe0] ss:$8 sps:$4 sm:$0xff]  }
  0xa5   :  { %1189 = vmatprep.subr.bf16.mxu1 %v2098_v63 }
  0xa7   :  { %916 = vmatpush2.bf16.msra.mxu0 %v2054_v47  ;;  %v2170_v47 = vld [vmem:[#allocation8 + $0xd4] ss:$8 sps:$4 sm:$0xff]  }
  0xa8   :  { %917 = vmatprep.subr.bf16.mxu0 %v2062_v48  ;;  %1190 = vmatpush1.bf16.msra.mxu1 %v2096_v0  ;;  %v2168_v48 = vld [vmem:[#allocation8 + $0xd0] ss:$8 sps:$4 sm:$0xff]  }
  0xa9   :  { %1191 = vmatprep.subr.bf16.mxu1 %v2101_v1 }
  0xab   :  { %918 = vmatpush2.bf16.msra.mxu0 %v2060_v49  ;;  %v2173_v49 = vld [vmem:[#allocation8 + $0xc4] ss:$8 sps:$4 sm:$0xff]  }
  0xac   :  { %919 = vmatprep.subr.bf16.mxu0 %v2068_v50  ;;  %1192 = vmatpush1.bf16.msra.mxu1 %v2099_v2  ;;  %v2171_v50 = vld [vmem:[#allocation8 + $0xc0] ss:$8 sps:$4 sm:$0xff]  }
  0xad   :  { %1193 = vmatprep.subr.bf16.mxu1 %v2104_v3  ;;  %v218_v3 = vlaneseq }
  0xaf   :  { %920 = vmatpush2.bf16.msra.mxu0 %v2066_v51  ;;  %v2176_v51 = vld [vmem:[#allocation8 + $0xb4] ss:$8 sps:$4 sm:$0xff]  }
  0xb0   :  { %921 = vmatprep.subr.bf16.mxu0 %v2074_v52  ;;  %1194 = vmatpush1.bf16.msra.mxu1 %v2102_v4  ;;  %v2174_v52 = vld [vmem:[#allocation8 + $0xb0] ss:$8 sps:$4 sm:$0xff]   ;;  %v219_v4 = vshrl.u32 %v218_v3, 7 }
  0xb1   :  { %1195 = vmatprep.subr.bf16.mxu1 %v2107_v5 }
  0xb2   :  { %v2425_v5 = vsub.s32 0, %v219_v4 }
  0xb3   :  { %922 = vmatpush2.bf16.msra.mxu0 %v2072_v53  ;;  %v2179_v53 = vld [vmem:[#allocation8 + $0xa4] ss:$8 sps:$4 sm:$0xff]  }
  0xb4   :  { %923 = vmatprep.subr.bf16.mxu0 %v2080_v54  ;;  %1196 = vmatpush1.bf16.msra.mxu1 %v2105_v6  ;;  %v2177_v54 = vld [vmem:[#allocation8 + $0xa0] ss:$8 sps:$4 sm:$0xff]   ;;  %v216_v6 = vld [vmem:[%s2452_s2] sm:$0x3] }
  0xb5   :  { %1197 = vmatprep.subr.bf16.mxu1 %v2110_v7  ;;  %v2430_v7 = vsub.s32 1, %v219_v4 }
  0xb7   :  { %924 = vmatpush2.bf16.msra.mxu0 %v2078_v55 }
  0xb8   :  { %925 = vmatprep.subr.bf16.mxu0 %v2086_v56  ;;  %1198 = vmatpush1.bf16.msra.mxu1 %v2108_v8  ;;  %v221_v8 = vrot.slane %v216_v6, %v2425_v5 }
  0xb9   :  { %1199 = vmatprep.subr.bf16.mxu1 %v2113_v9  ;;  %v225_v9 = vrot.slane %v216_v6, %v2430_v7 }
  0xbb   :  { %926 = vmatpush2.bf16.msra.mxu0 %v2084_v57 }
  0xbc   :  { %1200 = vmatpush1.bf16.msra.mxu1 %v2111_v10  ;;  %1434 = vmatprep.subr.bf16.mxu0 %v2140_v28  ;;  %v2185_v28 = vld [vmem:[#allocation8 + $0x84] ss:$8 sps:$4 sm:$0xff]  }
  0xbd   :  { %1201 = vmatprep.subr.bf16.mxu1 %v2116_v11 }
  0xbe   :  { %928 = vmatmul.mubr.bf16.vlgmr.msra.gmra.mxu0 %v1686_v58 }
  0xbf   :  { %1435 = vmatpush1.bf16.msra.mxu0 %v2138_v27  ;;  %v2180_v27 = vld [vmem:[#allocation8 + $0x90] ss:$8 sps:$4 sm:$0xff]  }
  0xc0   :  { %1202 = vmatpush2.bf16.msra.mxu1 %v2114_v12  ;;  %1436 = vmatprep.subr.bf16.mxu0 %v2143_v29  ;;  %v2183_v29 = vld [vmem:[#allocation8 + $0x80] ss:$8 sps:$4 sm:$0xff]  }
  0xc1   :  { %1203 = vmatprep.subr.bf16.mxu1 %v2119_v13 }
  0xc3   :  { %1437 = vmatpush1.bf16.msra.mxu0 %v2141_v30  ;;  %v2186_v30 = vld [vmem:[#allocation10 + $0x78] sm:$0xff]  }
  0xc4   :  { %1204 = vmatpush2.bf16.msra.mxu1 %v2117_v14  ;;  %1438 = vmatprep.subr.bf16.mxu0 %v2146_v31  ;;  %v2187_v31 = vld [vmem:[#allocation10 + $0x38] sm:$0xff]  }
  0xc5   :  { %1205 = vmatprep.subr.bf16.mxu1 %v2122_v15 }
  0xc7   :  { %1439 = vmatpush1.bf16.msra.mxu0 %v2144_v32  ;;  %v2188_v32 = vld [vmem:[#allocation10 + $0x70] sm:$0xff]  }
  0xc8   :  { %1206 = vmatpush2.bf16.msra.mxu1 %v2120_v16  ;;  %1440 = vmatprep.subr.bf16.mxu0 %v2149_v33  ;;  %v2189_v33 = vld [vmem:[#allocation10 + $0x30] sm:$0xff]  }
  0xc9   :  { %1207 = vmatprep.subr.bf16.mxu1 %v2125_v17 }
  0xcb   :  { %1441 = vmatpush1.bf16.msra.mxu0 %v2147_v34  ;;  %v2190_v34 = vld [vmem:[#allocation10 + $0x68] sm:$0xff]  }
  0xcc   :  { %1208 = vmatpush2.bf16.msra.mxu1 %v2123_v18  ;;  %1442 = vmatprep.subr.bf16.mxu0 %v2152_v35  ;;  %v2191_v35 = vld [vmem:[#allocation10 + $0x28] sm:$0xff]  }
  0xcd   :  { %1209 = vmatprep.subr.bf16.mxu1 %v2128_v19 }
  0xcf   :  { %1443 = vmatpush1.bf16.msra.mxu0 %v2150_v36  ;;  %v2192_v36 = vld [vmem:[#allocation10 + $0x60] sm:$0xff]  }
  0xd0   :  { %1210 = vmatpush2.bf16.msra.mxu1 %v2126_v20  ;;  %1444 = vmatprep.subr.bf16.mxu0 %v2155_v37  ;;  %v2193_v37 = vld [vmem:[#allocation10 + $0x20] sm:$0xff]  }
  0xd1   :  { %1211 = vmatprep.subr.bf16.mxu1 %v2131_v21 }
  0xd3   :  { %1445 = vmatpush1.bf16.msra.mxu0 %v2153_v38  ;;  %v2194_v38 = vld [vmem:[#allocation10 + $0x58] sm:$0xff]  }
  0xd4   :  { %1212 = vmatpush2.bf16.msra.mxu1 %v2129_v22  ;;  %1446 = vmatprep.subr.bf16.mxu0 %v2158_v39  ;;  %v2195_v39 = vld [vmem:[#allocation10 + $0x18] sm:$0xff]  }
  0xd5   :  { %1213 = vmatprep.subr.bf16.mxu1 %v2134_v23 }
  0xd7   :  { %1447 = vmatpush1.bf16.msra.mxu0 %v2156_v40  ;;  %v2196_v40 = vld [vmem:[#allocation10 + $0x50] sm:$0xff]  }
  0xd8   :  { %1214 = vmatpush2.bf16.msra.mxu1 %v2132_v24  ;;  %1448 = vmatprep.subr.bf16.mxu0 %v2161_v41  ;;  %v2197_v41 = vld [vmem:[#allocation10 + $0x10] sm:$0xff]  }
  0xd9   :  { %1215 = vmatprep.subr.bf16.mxu1 %v2137_v25 }
  0xdb   :  { %1449 = vmatpush1.bf16.msra.mxu0 %v2159_v42  ;;  %v1013_v42 = vld [vmem:[%s2454_s4] sm:$0x3] }
  0xdc   :  { %1216 = vmatpush2.bf16.msra.mxu1 %v2135_v26  ;;  %1450 = vmatprep.subr.bf16.mxu0 %v2164_v43  ;;  %v2182_v26 = vld [vmem:[#allocation8 + $0x94] ss:$8 sps:$4 sm:$0xff]   ;;  %v1018_v43 = vrot.slane %v1013_v42, %v2425_v5 }
  0xdd   :  { %1882 = vmatprep.subr.bf16.mxu1 %v2186_v30 }
  0xdf   :  { %1451 = vmatpush2.bf16.msra.mxu0 %v2162_v44  ;;  %v1022_v44 = vrot.slane %v1013_v42, %v2430_v7 }
  0xe0   :  { %1452 = vmatprep.subr.bf16.mxu0 %v2167_v45 }
  0xe3   :  { %1453 = vmatpush2.bf16.msra.mxu0 %v2165_v46 }
  0xe4   :  { %1454 = vmatprep.subr.bf16.mxu0 %v2170_v47 }
  0xe7   :  { %1455 = vmatpush2.bf16.msra.mxu0 %v2168_v48 }
  0xe8   :  { %1456 = vmatprep.subr.bf16.mxu0 %v2173_v49 }
  0xeb   :  { %1457 = vmatpush2.bf16.msra.mxu0 %v2171_v50 }
  0xec   :  { %1458 = vmatprep.subr.bf16.mxu0 %v2176_v51 }
  0xef   :  { %1459 = vmatpush2.bf16.msra.mxu0 %v2174_v52 }
  0xf0   :  { %1460 = vmatprep.subr.bf16.mxu0 %v2179_v53 }
  0xf3   :  { %1461 = vmatpush2.bf16.msra.mxu0 %v2177_v54 }
  0xf4   :  { %1462 = vmatprep.subr.bf16.mxu0 %v2182_v26 }
  0xf7   :  { %1463 = vmatpush2.bf16.msra.mxu0 %v2180_v27 }
  0xf8   :  { %1464 = vmatprep.subr.bf16.mxu0 %v2185_v28 }
  0xfb   :  { %1465 = vmatpush2.bf16.msra.mxu0 %v2183_v29 }
 0x13e   :  { %v847_v55 = vpop.f32.mrf.mxu0 }
 0x13f   :  { %v888_v57 = vpop.f32.mrf.mxu1  ;;  %v848_v10 = vadd.f32 %v847_v55, %v221_v8  ;;  %v2198_v55 = vld [vmem:[#allocation10 + $0x48] sm:$0xff]  }
 0x140   :  { %v849_v56 = vpop.f32.mrf.mxu0 }
 0x141   :  { %v890_v59 = vpop.f32.mrf.mxu1  ;;  %v850_v11 = vadd.f32 %v849_v56, %v225_v9  ;;  %v889_v12 = vadd.f32 %v888_v57, %v848_v10  ;;  %v2199_v56 = vld [vmem:[#allocation10 + $0x8] sm:$0xff]   ;;  %v2200_v57 = vld [vmem:[#allocation10 + $0x40] sm:$0xff]  }
 0x142   :  { %v851_v58 = vpop.f32.mrf.mxu0 }
 0x143   :  { %v892_v61 = vpop.f32.mrf.mxu1  ;;  %v891_v14 = vadd.f32 %v890_v59, %v850_v11  ;;  %v2201_v58 = vld [vmem:[#allocation10] sm:$0xff]  }
 0x144   :  { %v852_v60 = vpop.f32.mrf.mxu0  ;;  %v1262_v59 = vld [vmem:[%s2456_s6] sm:$0x3] }
 0x145   :  { %v893_v62 = vpop.f32.mrf.mxu1  ;;  %v1267_v60 = vrot.slane %v1262_v59, %v2425_v5  ;;  %v1271_v61 = vrot.slane %v1262_v59, %v2430_v7  ;;  %v1865_v5 = vld [vmem:[%s2458_s8] ss:$0 sm:$0xff]  ;;  %s2306_s8 = scalar_lea.vmem %s1672_s18, 128 }
 0x146   :  { %p2307_p11 = scmp.ne.s32.totalorder %s1672_s18, %s2306_s8  ;;  %p2312_p13 = scmp.lt.s32.totalorder %s2306_s8, %s2306_s8 }
 0x148   :  { %p2313_p0 = por %p2312_p13, %p2311_p12 }
 0x14a   :  { %p2314_p1 = pnand %p2313_p0, %p2307_p11 }
 0x15f   :  { %v970_v63 = vpop.f32.mrf.mxu1 }
 0x161   :  { %v972_v0 = vpop.f32.mrf.mxu1 }
 0x163   :  { %v974_v1 = vpop.f32.mrf.mxu1 }
 0x165   :  { %v975_v2 = vpop.f32.mrf.mxu1 }
 0x17e   :  { %v929_v13 = vpop.f32.mrf.mxu0 }
 0x17f   :  { %v930_v15 = vadd.f32 %v929_v13, %v889_v12 }
 0x180   :  { %v931_v16 = vpop.f32.mrf.mxu0 }
 0x181   :  { %v971_v17 = vadd.f32 %v970_v63, %v930_v15  ;;  %v932_v18 = vadd.f32 %v931_v16, %v891_v14 }
 0x182   :  { %v933_v19 = vpop.f32.mrf.mxu0 }
 0x183   :  { %v973_v20 = vadd.f32 %v972_v0, %v932_v18  ;;  %v977_v21 = vmax.f32 %v971_v17, 0.0 }
 0x184   :  { %v934_v22 = vpop.f32.mrf.mxu0 }
 0x185   :  { %v978_v23 = vmax.f32 %v973_v20, 0.0  ;;  %v979_v25 = vpack.c.bf16 %v977_v21, %v977_v21 }
 0x187   :  { %v980_v24 = vpack.c.bf16 %v978_v23, %v978_v23 }
 0x189   :  { %1217 = vmatprep.mubr.bf16.mxu1 %v980_v24 }
 0x18a   :  { %1218 = vmatmul.mubr.bf16.vlgmr.msra.gmra.mxu1 %v979_v25 }
 0x18b   :  { %1883 = vmatpush3.bf16.msra.mxu1 %v2187_v31 }
 0x18c   :  { %1884 = vmatprep.subr.bf16.mxu1 %v2188_v32 }
 0x18f   :  { %1885 = vmatpush3.bf16.msra.mxu1 %v2189_v33 }
 0x190   :  { %1886 = vmatprep.subr.bf16.mxu1 %v2190_v34 }
 0x193   :  { %1887 = vmatpush3.bf16.msra.mxu1 %v2191_v35 }
 0x194   :  { %1888 = vmatprep.subr.bf16.mxu1 %v2192_v36 }
 0x197   :  { %1889 = vmatpush3.bf16.msra.mxu1 %v2193_v37 }
 0x198   :  { %1890 = vmatprep.subr.bf16.mxu1 %v2194_v38 }
 0x19b   :  { %1891 = vmatpush3.bf16.msra.mxu1 %v2195_v39 }
 0x19c   :  { %1892 = vmatprep.subr.bf16.mxu1 %v2196_v40 }
 0x19f   :  { %1893 = vmatpush3.bf16.msra.mxu1 %v2197_v41 }
 0x1a0   :  { %1894 = vmatprep.subr.bf16.mxu1 %v2198_v55 }
 0x1a3   :  { %1895 = vmatpush3.bf16.msra.mxu1 %v2199_v56 }
 0x1a4   :  { %1896 = vmatprep.subr.bf16.mxu1 %v2200_v57 }
 0x1a7   :  { %1897 = vmatpush3.bf16.msra.mxu1 %v2201_v58 }
 0x24a   :  { %v1219_v45 = vpop.f32.mrf.mxu1 }
 0x24b   :  { %v1220_v46 = vadd.f32 %v1219_v45, %v1018_v43 }
 0x24c   :  { %v1221_v47 = vpop.f32.mrf.mxu1 }
 0x24d   :  { %v1222_v48 = vadd.f32 %v1221_v47, %v1022_v44  ;;  %v1226_v49 = vmax.f32 %v1220_v46, 0.0 }
 0x24e   :  { %v1223_v50 = vpop.f32.mrf.mxu1 }
 0x24f   :  { %v1227_v51 = vmax.f32 %v1222_v48, 0.0  ;;  %v1228_v54 = vpack.c.bf16 %v1226_v49, %v1226_v49 }
 0x250   :  { %v1224_v52 = vpop.f32.mrf.mxu1 }
 0x251   :  { %v1229_v53 = vpack.c.bf16 %v1227_v51, %v1227_v51 }
 0x253   :  { %1466 = vmatprep.mubr.bf16.mxu0 %v1229_v53 }
 0x254   :  { %1467 = vmatmul.mubr.bf16.vlgmr.msra.gmra.mxu0 %v1228_v54 }
 0x314   :  { %v1468_v62 = vpop.f32.mrf.mxu0 }
 0x315   :  { %v1469_v63 = vadd.f32 %v1468_v62, %v1267_v60 }
 0x316   :  { %v1470_v0 = vpop.f32.mrf.mxu0 }
 0x317   :  { %v1471_v1 = vadd.f32 %v1470_v0, %v1271_v61  ;;  %v1475_v2 = vmax.f32 %v1469_v63, 0.0 }
 0x318   :  { %v1472_v3 = vpop.f32.mrf.mxu0 }
 0x319   :  { %v1476_v4 = vmax.f32 %v1471_v1, 0.0  ;;  %v1477_v9 = vpack.c.bf16 %v1475_v2, %v1475_v2 }
 0x31a   :  { %v1473_v6 = vpop.f32.mrf.mxu0 }
 0x31b   :  { %v1478_v8 = vpack.c.bf16 %v1476_v4, %v1476_v4 }
 0x31d   :  { %1646 = vmatprep.mubr.bf16.mxu1 %v1478_v8 }
 0x31e   :  { %1647 = vmatmul.mubr.bf16.vlgmr.msra.gmra.mxu1 %v1477_v9 }
 0x3de   :  { %v1898_v10 = vpop.f32.mrf.mxu1 }
 0x3e0   :  { %v1899_v11 = vpop.f32.mrf.mxu1 }
 0x3e1   :  { %v1900_v12 = vadd.f32 %v1899_v11, %v1898_v10 }
 0x3e2   :  { %v1901_v7 = vpop.f32.mrf.mxu1 }
 0x3e3   :  { %v1649_v13 = vadd.f32 %v1900_v12, %v1865_v5 }
 0x3e4   :  { %v1902_v14 = vpop.f32.mrf.mxu1 }
 0x3e5   :  { %1654 = vmax.xlane.f32.xlu0 %v1649_v13 }
 0x46e   :  { %v1655_v15 = vpop.xlane.xlu0 %1654 }
 0x46f   :  { %v1656_v16 = vsub.f32 %v1649_v13, %v1655_v15 }
 0x471   :  { %v1657_v17 = vmul.f32 1.442695, %v1656_v16 }
 0x473   :  { %2202 = vpow2.f32 %v1657_v17 }
 0x480   :  { %v2203_v18 = vpop.eup %2202 }
 0x481   :  { %1659 = vadd.xlane.f32.xlu0 %v2203_v18 }
 0x50a   :  { %v1660_v19 = vpop.xlane.xlu0 %1659 }
 0x50b   :  { %2204 = vlog2.f32 %v1660_v19 }
 0x518   :  { %v2205_v20 = vpop.eup %2204 }
 0x519   :  { %v1662_v21 = vmul.f32 0.6931472, %v2205_v20 }
 0x51b   :  { %v1663_v22 = vsub.f32 %v1656_v16, %v1662_v21 }
 0x51d   :  { %1664 = vst [vmem:[#allocation11] sm:$0xff] %v1663_v22 }
 0x51e   :  { %2317 = shalt.err (!%p2314_p1)
}
 0x51f   :  { %1674 = dma.vmem_to_hbm [thread:$0]  %s1672_s18, 128, %s2459_s9, [#allocation4]  }
 0x520   :  { %2332 = dma.done.wait [#allocation4], 128  }
 0x521   :  { %2333 = vsyncadd [#allocation4], 4294967168 }
 0x522   :  { %1678 = vsyncpa [#allocation3], 1 }
 0x523   :  { %1679 = vsyncpa [#allocation6], 1 }
 0x524   :  { %1680 = vsyncpa [#allocation9], 1 }
 0x525   :  { %1681 = vsyncpa [#allocation4], 1 }

</bundles_post_ra>
